<compile_context>
chip_gen: v5e
topology: v5e:2x2
jax: 0.10.0
libtpu: 0.0.40
codegen_flags: <defaults>
</compile_context>

<pallas_src>
import functools

import jax
import jax.numpy as jnp
from jax.experimental import pallas as pl
from jax.experimental.pallas import tpu as pltpu


def _round_up(x, m):
    return ((x + m - 1) // m) * m


# ------------------------------ Pallas kernel --------------------------------
def _decoder_step_kernel(
    pf_ref,       # (Bt, Ps, E)   projected patch features   (compute dtype)
    pfa_ref,      # (Bt, Ps, A)   pf @ aw1[:E] + ab1          (pfa dtype)
    cap_ref,      # (1, Bt, E)    caption embedding for timestep t
    awh_ref,      # (H, A)        aw1[E:]  (hidden half of attn_fc1)
    aw2_ref,      # (1, A)        attn_fc2 weight             (energy dtype)
    ab2_ref,      # (1, 1)        attn_fc2 bias
    wihe_ref,     # (E, 4H)       LSTM W_ih^T rows for the caption embedding
    wihc_ref,     # (E, 4H)       LSTM W_ih^T rows for the context
    whh_ref,      # (H, 4H)       LSTM W_hh^T
    blstm_ref,    # (1, 4H)       b_ih + b_hh
    h_out_ref,    # (1, Bt, H)    out: LSTM hidden state at timestep t
    ctx_out_ref,  # (1, Bt, E)    out: attention context at timestep t
    attn_ref,     # (1, Bt, Ps)   out: attention weights at timestep t
    h_scr,        # (Bt, H)       LSTM hidden-state carry across t
    c_scr,        # (Bt, H)       LSTM cell-state  carry across t
    *,
    num_patches,
    energy_dtype,
):
    # INVARIANT: grid is (batch_block, t) with t innermost and "arbitrary";
    # h_scr/c_scr carry the recurrence across t within each batch block.
    # Do NOT reorder the grid or mark t "parallel" -- that silently corrupts
    # the recurrence.
    t = pl.program_id(1)
    Bt, Ps, _ = pf_ref.shape
    H = h_scr.shape[1]
    cd = pf_ref.dtype                       # matmul operand dtype (f32 / bf16)
    ed = jnp.dtype(energy_dtype)            # attention-energy dtype
    f32 = jnp.float32

    @pl.when(t == 0)
    def _init():
        h_scr[...] = jnp.zeros_like(h_scr)
        c_scr[...] = jnp.zeros_like(c_scr)

    h = h_scr[...]
    c = c_scr[...]

    # ---- additive attention over patches ------------------------------------
    # Patch half (pf @ aw1[:E] + ab1) is precomputed once in XLA; per-step
    # cost is a tiny (Bt,H)x(H,A) matmul plus the tanh / softmax.
    hq = jnp.dot(h.astype(cd), awh_ref[...],
                 preferred_element_type=f32)                          # (Bt, A)
    # Energy / tanh in `energy_dtype` (bf16 on v6e/v7x: ~2x EUP tanh
    # throughput, packed vregs); softmax max/exp/sum stay f32.
    energy = jnp.tanh(pfa_ref[...].astype(ed) + hq.astype(ed)[:, None, :])
    att = jnp.sum((energy * aw2_ref[...]).astype(f32), axis=-1)       # (Bt, Ps)
    att = att + ab2_ref[...]          # constant shift kept for fidelity

    if Ps > num_patches:              # static branch: only when P was padded
        pidx = jax.lax.broadcasted_iota(jnp.int32, (Bt, Ps), 1)
        att = jnp.where(pidx < num_patches, att, -1e30)

    att = att - jnp.max(att, axis=-1, keepdims=True)
    w = jnp.exp(att)
    s = jnp.sum(w, axis=-1, keepdims=True)
    r = pl.reciprocal(s, approx=True)         # EUP vrcp ...
    r = r * (2.0 - s * r)                     # ... + 1 Newton step (~f32 exact)
    w = w * r                                                         # f32
    # Masked store of width Ps (sublane-padded, not 128): this write is tiny.
    attn_ref[0] = w.astype(attn_ref.dtype)

    # context = bmm(w, pf): batched MXU contraction (MXU is otherwise idle in
    # this phase on v6e/v7x; on v5e a VPU sublane-reduce may win at very small
    # Bt -- pick per generation from measurement).  w is cast to the matmul
    # operand dtype; keep it f32 here if accuracy regressions ever appear.
    ctx = jnp.einsum("bqp,bpe->bqe", w[:, None, :].astype(cd), pf_ref[...],
                     preferred_element_type=f32)[:, 0, :]             # (Bt, E)
    ctx_out_ref[0] = ctx.astype(ctx_out_ref.dtype)

    # ---- LSTM cell (PyTorch gate order: i, f, g, o) --------------------------
    # concat([cap, ctx]) @ W_ih  ==  cap @ W_ih[:E] + ctx @ W_ih[E:]
    gates = (
        jnp.dot(cap_ref[0].astype(cd), wihe_ref[...],
                preferred_element_type=f32)
        + jnp.dot(ctx.astype(cd), wihc_ref[...], preferred_element_type=f32)
        + jnp.dot(h.astype(cd), whh_ref[...], preferred_element_type=f32)
        + blstm_ref[...]
    )                                                                 # (Bt, 4H)
    # NOTE: when H is not a multiple of 128 these lane slices need a relayout;
    # real configs should pick H % 128 == 0 to make them free views.
    i_g = jax.nn.sigmoid(gates[:, 0 * H:1 * H])
    f_g = jax.nn.sigmoid(gates[:, 1 * H:2 * H])
    g_g = jnp.tanh(gates[:, 2 * H:3 * H])
    o_g = jax.nn.sigmoid(gates[:, 3 * H:4 * H])
    c_new = f_g * c + i_g * g_g
    h_new = o_g * jnp.tanh(c_new)
    h_scr[...] = h_new
    c_scr[...] = c_new
    h_out_ref[0] = h_new.astype(h_out_ref.dtype)


# --------------------------------- wrapper ------------------------------------
@functools.partial(
    jax.jit,
    static_argnames=("compute_dtype", "energy_dtype", "pfa_dtype",
                     "num_batch_blocks"),
)
def patch_attention_decoder(vit_out, captions, params, *,
                            compute_dtype=jnp.bfloat16,
                            energy_dtype=jnp.bfloat16,
                            pfa_dtype=jnp.bfloat16,
                            num_batch_blocks=1):
    """vit_out: (B, P, Dv) f32 ViT last_hidden_state; captions: (B, L) int32.

    Returns (logits (B, T, V), attn_weights (B, T, P)) with T = L - 1.

    * compute_dtype: matmul-operand dtype inside the kernel (f32 accumulate).
    * energy_dtype:  dtype of the attention energy / tanh (bf16 on v6e/v7x,
      f32 on v5-class chips which have no bf16 VPU/EUP).
    * pfa_dtype:     storage dtype of the precomputed patch-attention term
      (bf16 recommended; f32 only for exact numerics checks).
    * num_batch_blocks: >1 splits batch over the leading "parallel" grid axis
      (use 2 on v7x only when each core still gets MXU-filling row counts).
    """
    f32 = jnp.float32
    cd = jnp.dtype(compute_dtype)
    ed = jnp.dtype(energy_dtype)
    pd = jnp.dtype(pfa_dtype)

    B, P, _ = vit_out.shape
    E = params["wp"].shape[1]
    H = params["whh"].shape[0]
    A = params["aw1"].shape[1]
    V = params["wout"].shape[1]

    # Sublane-multiple padding only (8 for f32, 16 if any resident patch /
    # batch tensor is 16-bit) -- NOT 128 lanes.
    sub = 16 if (cd.itemsize == 2 or pd.itemsize == 2) else 8
    Ps = _round_up(P, sub)

    assert num_batch_blocks >= 1
    Bt = _round_up(-(-B // num_batch_blocks), sub)   # padded batch per block
    Bp = Bt * num_batch_blocks

    # ---- one-shot, step-invariant precompute (plain XLA glue) ----------------
    cap_emb = params["embedding"][captions[:, :-1]]                 # (B, T, E)
    T = cap_emb.shape[1]
    cap_t = jnp.transpose(cap_emb, (1, 0, 2)).astype(cd)            # (T, B, E)
    cap_t = jnp.pad(cap_t, ((0, 0), (0, Bp - B), (0, 0)))

    pf = (vit_out @ params["wp"] + params["bp"]).astype(f32)        # (B, P, E)
    pfa = pf @ params["aw1"][:E] + params["ab1"]                    # (B, P, A)
    pad = ((0, Bp - B), (0, Ps - P), (0, 0))
    pf_pad = jnp.pad(pf, pad).astype(cd)
    pfa_pad = jnp.pad(pfa, pad).astype(pd)

    awh = params["aw1"][E:].astype(cd)                              # (H, A)
    aw2 = params["aw2"].astype(ed)                                  # (1, A)
    ab2 = params["ab2"].astype(f32)                                 # (1, 1)
    wihe = params["wih"][:E].astype(cd)                             # (E, 4H)
    wihc = params["wih"][E:].astype(cd)                             # (E, 4H)
    whh = params["whh"].astype(cd)                                  # (H, 4H)
    blstm = params["blstm"].astype(f32)                             # (1, 4H)

    # pf / pfa index maps are t-invariant -> Pallas re-uses the resident block
    # across all timesteps of a batch block (no per-step re-DMA).
    in_specs = [
        pl.BlockSpec((Bt, Ps, E), lambda b, t: (b, 0, 0)),      # pf
        pl.BlockSpec((Bt, Ps, A), lambda b, t: (b, 0, 0)),      # pfa
        pl.BlockSpec((1, Bt, E), lambda b, t: (t, b, 0)),       # caption emb @ t
        pl.BlockSpec((H, A), lambda b, t: (0, 0)),              # aw1[E:]
        pl.BlockSpec((1, A), lambda b, t: (0, 0)),              # aw2
        pl.BlockSpec((1, 1), lambda b, t: (0, 0)),              # ab2
        pl.BlockSpec((E, 4 * H), lambda b, t: (0, 0)),          # wih[:E]
        pl.BlockSpec((E, 4 * H), lambda b, t: (0, 0)),          # wih[E:]
        pl.BlockSpec((H, 4 * H), lambda b, t: (0, 0)),          # whh
        pl.BlockSpec((1, 4 * H), lambda b, t: (0, 0)),          # blstm
    ]
    out_specs = [
        pl.BlockSpec((1, Bt, H), lambda b, t: (t, b, 0)),       # h_t
        pl.BlockSpec((1, Bt, E), lambda b, t: (t, b, 0)),       # ctx_t
        pl.BlockSpec((1, Bt, Ps), lambda b, t: (t, b, 0)),      # attn weights
    ]
    scratch_shapes = [
        pltpu.VMEM((Bt, H), f32),   # LSTM h carry
        pltpu.VMEM((Bt, H), f32),   # LSTM c carry
    ]

    h_t, ctx_t, attn_t = pl.pallas_call(
        functools.partial(_decoder_step_kernel,
                          num_patches=P, energy_dtype=ed),
        out_shape=(
            jax.ShapeDtypeStruct((T, Bp, H), f32),
            jax.ShapeDtypeStruct((T, Bp, E), f32),
            jax.ShapeDtypeStruct((T, Bp, Ps), f32),
        ),
        grid_spec=pltpu.PrefetchScalarGridSpec(
            num_scalar_prefetch=0,
            grid=(num_batch_blocks, T),
            in_specs=in_specs,
            out_specs=out_specs,
            scratch_shapes=scratch_shapes,
        ),
        compiler_params=pltpu.CompilerParams(
            # Recurrence lives in VMEM scratch -> t stays innermost/arbitrary.
            dimension_semantics=("parallel", "arbitrary"),
            vmem_limit_bytes=48 * 1024 * 1024,
        ),
    )(pf_pad, pfa_pad, cap_t, awh, aw2, ab2, wihe, wihc, whh, blstm)

    # ---- hoisted fc_out projection: one MXU-filling matmul over M = B*T ------
    # Transpose/crop only the SMALL per-step tensors; logits come out directly
    # in the final (B, T, V) layout (no transpose of the largest tensor).
    h_bt = jnp.transpose(h_t, (1, 0, 2))[:B]                        # (B, T, H)
    ctx_bt = jnp.transpose(ctx_t, (1, 0, 2))[:B]                    # (B, T, E)
    attn = jnp.transpose(attn_t, (1, 0, 2))[:B, :, :P]              # (B, T, P)

    wouth = params["wout"][:H].astype(cd)                           # (H, V)
    woutc = params["wout"][H:].astype(cd)                           # (E, V)
    logits = (
        jnp.einsum("bth,hv->btv", h_bt.astype(cd), wouth,
                   preferred_element_type=f32)
        + jnp.einsum("bte,ev->btv", ctx_bt.astype(cd), woutc,
                     preferred_element_type=f32)
        + params["bout"].astype(f32)
    )                                                               # (B, T, V)
    return logits, attn


# ----------------------------- pure-JAX reference ------------------------------
def reference(vit_out, captions, params):
    pf = vit_out @ params["wp"] + params["bp"]                 # (B, P, E)
    emb = params["embedding"][captions[:, :-1]]                # (B, T, E)
    B, T, _ = emb.shape
    P = pf.shape[1]
    H = params["whh"].shape[0]
    h = jnp.zeros((B, H), jnp.float32)
    c = jnp.zeros((B, H), jnp.float32)
    outs, attns = [], []
    for t in range(T):
        h_exp = jnp.broadcast_to(h[:, None, :], (B, P, H))
        concat = jnp.concatenate([pf, h_exp], -1)
        energy = jnp.tanh(concat @ params["aw1"] + params["ab1"][0])
        att = jnp.sum(energy * params["aw2"][0], -1) + params["ab2"][0, 0]
        w = jax.nn.softmax(att, axis=1)
        ctx = jnp.einsum("bp,bpe->be", w, pf)
        x = jnp.concatenate([emb[:, t], ctx], -1)
        gates = x @ params["wih"] + h @ params["whh"] + params["blstm"][0]
        i = jax.nn.sigmoid(gates[:, :H])
        f = jax.nn.sigmoid(gates[:, H:2 * H])
        g = jnp.tanh(gates[:, 2 * H:3 * H])
        o = jax.nn.sigmoid(gates[:, 3 * H:])
        c = f * c + i * g
        h = o * jnp.tanh(c)
        out = jnp.concatenate([h, ctx], -1) @ params["wout"] + params["bout"][0]
        outs.append(out)
        attns.append(w)
    return jnp.stack(outs, 1), jnp.stack(attns, 1)


# ------------------------------------ main -------------------------------------
if __name__ == "__main__":
    # Small shapes consistent with the module (embed_dim == hidden_dim is
    # required by the module's zero-init hidden state in attention()).
    B, P, Dv = 2, 8, 64          # Dv stands in for ViT's 768
    E = H = 32                   # embed_dim == hidden_dim
    A = 256                      # attn_fc1 width (hardcoded 256 in the module)
    V = 64                       # vocab_size
    L = 9                        # caption length -> T = 8 decode steps

    key = jax.random.PRNGKey(0)
    ks = jax.random.split(key, 16)
    s = 0.1
    params = {
        "embedding": jax.random.normal(ks[0], (V, E), jnp.float32) * s,
        "wp":    jax.random.normal(ks[1], (Dv, E), jnp.float32) * s,
        "bp":    jax.random.normal(ks[2], (1, E), jnp.float32) * s,
        "aw1":   jax.random.normal(ks[3], (E + H, A), jnp.float32) * s,
        "ab1":   jax.random.normal(ks[4], (1, A), jnp.float32) * s,
        "aw2":   jax.random.normal(ks[5], (1, A), jnp.float32) * s,
        "ab2":   jax.random.normal(ks[6], (1, 1), jnp.float32) * s,
        "wih":   jax.random.normal(ks[7], (2 * E, 4 * H), jnp.float32) * s,
        "whh":   jax.random.normal(ks[8], (H, 4 * H), jnp.float32) * s,
        "blstm": jax.random.normal(ks[9], (1, 4 * H), jnp.float32) * s,
        "wout":  jax.random.normal(ks[10], (H + E, V), jnp.float32) * s,
        "bout":  jax.random.normal(ks[11], (1, V), jnp.float32) * s,
    }

    vit_out = jax.random.normal(ks[12], (B, P, Dv), jnp.float32)
    captions = jax.random.randint(ks[13], (B, L), 0, V, jnp.int32)

    ref_logits, ref_attn = reference(vit_out, captions, params)

    # Exact config: f32 everywhere -> tight check against the reference.
    logits, attn = jax.block_until_ready(patch_attention_decoder(
        vit_out, captions, params,
        compute_dtype=jnp.float32, energy_dtype=jnp.float32,
        pfa_dtype=jnp.float32))
    assert logits.shape == (B, L - 1, V) and attn.shape == (B, L - 1, P)
    assert jnp.allclose(logits, ref_logits, atol=1e-4, rtol=1e-4)
    assert jnp.allclose(attn, ref_attn, atol=1e-5, rtol=1e-4)

    # Perf config: bf16 matmul operands + bf16-stored pfa on all chips; bf16
    # attention-energy/tanh on v6e/v7x, f32 energy on v5-class and older chips
    # (no bf16 VPU/EUP there -> bf16 elementwise only inserts converts).
    kind = jax.devices()[0].device_kind.lower()
    perf_energy_dtype = (jnp.float32
                         if any(g in kind for g in ("v2", "v3", "v4", "v5"))
                         else jnp.bfloat16)
    logits16, attn16 = jax.block_until_ready(patch_attention_decoder(
        vit_out, captions, params,
        compute_dtype=jnp.bfloat16, energy_dtype=perf_energy_dtype,
        pfa_dtype=jnp.bfloat16))
    assert logits16.shape == (B, L - 1, V) and attn16.shape == (B, L - 1, P)
    assert jnp.allclose(logits16, ref_logits, atol=5e-2, rtol=5e-2)
    assert jnp.allclose(attn16, ref_attn, atol=5e-2, rtol=5e-2)

    print("KERNEL_OK")
</pallas_src>

<mosaic_0001>
module attributes {stable_mosaic.version = 11 : i64} {
  func.func @_decoder_step_kernel(%arg0: i32, %arg1: i32, %arg2: memref<8x8x32xf32, #tpu.memory_space<vmem>>, %arg3: memref<8x8x256xf32, #tpu.memory_space<vmem>>, %arg4: memref<1x8x32xf32, #tpu.memory_space<vmem>>, %arg5: memref<32x256xf32, #tpu.memory_space<vmem>>, %arg6: memref<1x256xf32, #tpu.memory_space<vmem>>, %arg7: memref<1x1xf32, #tpu.memory_space<vmem>>, %arg8: memref<32x128xf32, #tpu.memory_space<vmem>>, %arg9: memref<32x128xf32, #tpu.memory_space<vmem>>, %arg10: memref<32x128xf32, #tpu.memory_space<vmem>>, %arg11: memref<1x128xf32, #tpu.memory_space<vmem>>, %arg12: memref<1x8x32xf32, #tpu.memory_space<vmem>>, %arg13: memref<1x8x32xf32, #tpu.memory_space<vmem>>, %arg14: memref<1x8x8xf32, #tpu.memory_space<vmem>>, %arg15: memref<8x32xf32, #tpu.memory_space<vmem>>, %arg16: memref<8x32xf32, #tpu.memory_space<vmem>>) attributes {dimension_semantics = [#tpu.dimension_semantics<parallel>, #tpu.dimension_semantics<arbitrary>], iteration_bounds = array<i64: 1, 8>, scalar_prefetch = 0 : i64, scratch_operands = 2 : i64, tpu.core_type = #tpu.core_type<tc>, window_params = [{transform_indices = @transform_0, window_bounds = array<i64: 8, 8, 32>}, {transform_indices = @transform_1, window_bounds = array<i64: 8, 8, 256>}, {transform_indices = @transform_2, window_bounds = array<i64: 1, 8, 32>}, {pipeline_mode = #tpu.pipeline_mode<synchronous>, transform_indices = @transform_3, window_bounds = array<i64: 32, 256>}, {pipeline_mode = #tpu.pipeline_mode<synchronous>, transform_indices = @transform_4, window_bounds = array<i64: 1, 256>}, {pipeline_mode = #tpu.pipeline_mode<synchronous>, transform_indices = @transform_5, window_bounds = array<i64: 1, 1>}, {pipeline_mode = #tpu.pipeline_mode<synchronous>, transform_indices = @transform_6, window_bounds = array<i64: 32, 128>}, {pipeline_mode = #tpu.pipeline_mode<synchronous>, transform_indices = @transform_7, window_bounds = array<i64: 32, 128>}, {pipeline_mode = #tpu.pipeline_mode<synchronous>, transform_indices = @transform_8, window_bounds = array<i64: 32, 128>}, {pipeline_mode = #tpu.pipeline_mode<synchronous>, transform_indices = @transform_9, window_bounds = array<i64: 1, 128>}, {transform_indices = @transform_10, window_bounds = array<i64: 1, 8, 32>}, {transform_indices = @transform_11, window_bounds = array<i64: 1, 8, 32>}, {transform_indices = @transform_12, window_bounds = array<i64: 1, 8, 8>}]} {
    %c0_i32 = arith.constant 0 : i32
    %0 = arith.cmpi eq, %arg1, %c0_i32 : i32
    %1 = arith.extui %0 : i1 to i32
    %c0_i32_0 = arith.constant 0 : i32
    %2 = arith.cmpi ne, %1, %c0_i32_0 : i32
    scf.if %2 {
      %cst_51 = arith.constant 0.000000e+00 : f32
      %87 = vector.broadcast %cst_51 : f32 to vector<8x32xf32>
      %c0_52 = arith.constant 0 : index
      %c0_53 = arith.constant 0 : index
      %88 = vector.load %arg15[%c0_52, %c0_53] : memref<8x32xf32, #tpu.memory_space<vmem>>, vector<8x32xf32>
      tpu.vector_store %arg15[%c0_52, %c0_53], %87 {strides = array<i32>} : memref<8x32xf32, #tpu.memory_space<vmem>>, vector<8x32xf32>,
      %cst_54 = arith.constant 0.000000e+00 : f32
      %89 = vector.broadcast %cst_54 : f32 to vector<8x32xf32>
      %c0_55 = arith.constant 0 : index
      %c0_56 = arith.constant 0 : index
      %90 = vector.load %arg16[%c0_55, %c0_56] : memref<8x32xf32, #tpu.memory_space<vmem>>, vector<8x32xf32>
      tpu.vector_store %arg16[%c0_55, %c0_56], %89 {strides = array<i32>} : memref<8x32xf32, #tpu.memory_space<vmem>>, vector<8x32xf32>,
    } else {
    }
    %c0 = arith.constant 0 : index
    %c0_1 = arith.constant 0 : index
    %3 = vector.load %arg15[%c0, %c0_1] : memref<8x32xf32, #tpu.memory_space<vmem>>, vector<8x32xf32>
    %c0_2 = arith.constant 0 : index
    %c0_3 = arith.constant 0 : index
    %4 = vector.load %arg16[%c0_2, %c0_3] : memref<8x32xf32, #tpu.memory_space<vmem>>, vector<8x32xf32>
    %c0_4 = arith.constant 0 : index
    %c0_5 = arith.constant 0 : index
    %5 = vector.load %arg5[%c0_4, %c0_5] : memref<32x256xf32, #tpu.memory_space<vmem>>, vector<32x256xf32>
    %cst = arith.constant dense<0.000000e+00> : vector<8x256xf32>
    %6 = tpu.matmul %3, %5, %cst {dimension_numbers = #tpu.dot_dimension_numbers<[1], [0], [0], [1], [0, 0, 1, 1], [], []>} : vector<8x32xf32>, vector<32x256xf32>, vector<8x256xf32> -> vector<8x256xf32>
    %c0_6 = arith.constant 0 : index
    %c0_7 = arith.constant 0 : index
    %c0_8 = arith.constant 0 : index
    %7 = vector.load %arg3[%c0_6, %c0_7, %c0_8] : memref<8x8x256xf32, #tpu.memory_space<vmem>>, vector<8x8x256xf32>
    %8 = vector.shape_cast %6 : vector<8x256xf32> to vector<8x1x256xf32>
    %9 = vector.broadcast %8 : vector<8x1x256xf32> to vector<8x8x256xf32>
    %10 = arith.addf %7, %9 : vector<8x8x256xf32>
    %11 = math.tanh %10 : vector<8x8x256xf32>
    %c0_9 = arith.constant 0 : index
    %c0_10 = arith.constant 0 : index
    %12 = vector.load %arg6[%c0_9, %c0_10] : memref<1x256xf32, #tpu.memory_space<vmem>>, vector<1x256xf32>
    %13 = vector.shape_cast %12 : vector<1x256xf32> to vector<1x1x256xf32>
    %14 = vector.broadcast %13 : vector<1x1x256xf32> to vector<8x8x256xf32>
    %15 = arith.mulf %11, %14 : vector<8x8x256xf32>
    %cst_11 = arith.constant dense<0.000000e+00> : vector<8x8xf32>
    %16 = vector.multi_reduction <add>, %15, %cst_11 [2] : vector<8x8x256xf32> to vector<8x8xf32>
    %c0_12 = arith.constant 0 : index
    %c0_13 = arith.constant 0 : index
    %17 = vector.load %arg7[%c0_12, %c0_13] : memref<1x1xf32, #tpu.memory_space<vmem>>, vector<1x1xf32>
    %18 = vector.broadcast %17 : vector<1x1xf32> to vector<8x8xf32>
    %19 = arith.addf %16, %18 : vector<8x8xf32>
    %cst_14 = arith.constant dense<0xFF800000> : vector<8xf32>
    %20 = vector.multi_reduction <maximumf>, %19, %cst_14 [1] : vector<8x8xf32> to vector<8xf32>
    %21 = vector.shape_cast %20 : vector<8xf32> to vector<8x1xf32>
    %22 = vector.broadcast %21 : vector<8x1xf32> to vector<8x8xf32>
    %23 = arith.subf %19, %22 : vector<8x8xf32>
    %24 = math.exp %23 : vector<8x8xf32>
    %cst_15 = arith.constant dense<0.000000e+00> : vector<8xf32>
    %25 = vector.multi_reduction <add>, %24, %cst_15 [1] : vector<8x8xf32> to vector<8xf32>
    %26 = vector.shape_cast %25 : vector<8xf32> to vector<8x1xf32>
    %27 = tpu.reciprocal %26 {approx = true} : vector<8x1xf32> -> vector<8x1xf32>
    %28 = arith.mulf %26, %27 : vector<8x1xf32>
    %cst_16 = arith.constant 2.000000e+00 : f32
    %29 = vector.broadcast %cst_16 : f32 to vector<8x1xf32>
    %30 = arith.subf %29, %28 : vector<8x1xf32>
    %31 = arith.mulf %27, %30 : vector<8x1xf32>
    %32 = vector.broadcast %31 : vector<8x1xf32> to vector<8x8xf32>
    %33 = arith.mulf %24, %32 : vector<8x8xf32>
    %c0_17 = arith.constant 0 : index
    %c0_18 = arith.constant 0 : index
    %c0_19 = arith.constant 0 : index
    %34 = vector.load %arg14[%c0_17, %c0_18, %c0_19] : memref<1x8x8xf32, #tpu.memory_space<vmem>>, vector<1x8x8xf32>
    %35 = vector.shape_cast %34 : vector<1x8x8xf32> to vector<8x8xf32>
    %36 = vector.shape_cast %33 : vector<8x8xf32> to vector<1x8x8xf32>
    tpu.vector_store %arg14[%c0_17, %c0_18, %c0_19], %36 {strides = array<i32>} : memref<1x8x8xf32, #tpu.memory_space<vmem>>, vector<1x8x8xf32>,
    %37 = vector.shape_cast %33 : vector<8x8xf32> to vector<8x1x8xf32>
    %c0_20 = arith.constant 0 : index
    %c0_21 = arith.constant 0 : index
    %c0_22 = arith.constant 0 : index
    %38 = vector.load %arg2[%c0_20, %c0_21, %c0_22] : memref<8x8x32xf32, #tpu.memory_space<vmem>>, vector<8x8x32xf32>
    "tpu.trace_start"() <{level = 10 : i32, message = "bqp,bpe->bqe"}> : () -> ()
    %cst_23 = arith.constant dense<0.000000e+00> : vector<8x1x32xf32>
    %39 = tpu.matmul %37, %38, %cst_23 {dimension_numbers = #tpu.dot_dimension_numbers<[2], [1], [1], [2], [0, 0, 0, 1, 1, 2], [0], [0]>} : vector<8x1x8xf32>, vector<8x8x32xf32>, vector<8x1x32xf32> -> vector<8x1x32xf32>
    "tpu.trace_stop"() : () -> ()
    %40 = vector.shape_cast %39 : vector<8x1x32xf32> to vector<8x32xf32>
    %c0_24 = arith.constant 0 : index
    %c0_25 = arith.constant 0 : index
    %c0_26 = arith.constant 0 : index
    %41 = vector.load %arg13[%c0_24, %c0_25, %c0_26] : memref<1x8x32xf32, #tpu.memory_space<vmem>>, vector<1x8x32xf32>
    %42 = vector.shape_cast %41 : vector<1x8x32xf32> to vector<8x32xf32>
    %43 = vector.shape_cast %40 : vector<8x32xf32> to vector<1x8x32xf32>
    tpu.vector_store %arg13[%c0_24, %c0_25, %c0_26], %43 {strides = array<i32>} : memref<1x8x32xf32, #tpu.memory_space<vmem>>, vector<1x8x32xf32>,
    %c0_27 = arith.constant 0 : index
    %c0_28 = arith.constant 0 : index
    %c0_29 = arith.constant 0 : index
    %44 = vector.load %arg4[%c0_27, %c0_28, %c0_29] : memref<1x8x32xf32, #tpu.memory_space<vmem>>, vector<1x8x32xf32>
    %45 = vector.shape_cast %44 : vector<1x8x32xf32> to vector<8x32xf32>
    %c0_30 = arith.constant 0 : index
    %c0_31 = arith.constant 0 : index
    %46 = vector.load %arg8[%c0_30, %c0_31] : memref<32x128xf32, #tpu.memory_space<vmem>>, vector<32x128xf32>
    %cst_32 = arith.constant dense<0.000000e+00> : vector<8x128xf32>
    %47 = tpu.matmul %45, %46, %cst_32 {dimension_numbers = #tpu.dot_dimension_numbers<[1], [0], [0], [1], [0, 0, 1, 1], [], []>} : vector<8x32xf32>, vector<32x128xf32>, vector<8x128xf32> -> vector<8x128xf32>
    %c0_33 = arith.constant 0 : index
    %c0_34 = arith.constant 0 : index
    %48 = vector.load %arg9[%c0_33, %c0_34] : memref<32x128xf32, #tpu.memory_space<vmem>>, vector<32x128xf32>
    %cst_35 = arith.constant dense<0.000000e+00> : vector<8x128xf32>
    %49 = tpu.matmul %40, %48, %cst_35 {dimension_numbers = #tpu.dot_dimension_numbers<[1], [0], [0], [1], [0, 0, 1, 1], [], []>} : vector<8x32xf32>, vector<32x128xf32>, vector<8x128xf32> -> vector<8x128xf32>
    %50 = arith.addf %47, %49 : vector<8x128xf32>
    %c0_36 = arith.constant 0 : index
    %c0_37 = arith.constant 0 : index
    %51 = vector.load %arg10[%c0_36, %c0_37] : memref<32x128xf32, #tpu.memory_space<vmem>>, vector<32x128xf32>
    %cst_38 = arith.constant dense<0.000000e+00> : vector<8x128xf32>
    %52 = tpu.matmul %3, %51, %cst_38 {dimension_numbers = #tpu.dot_dimension_numbers<[1], [0], [0], [1], [0, 0, 1, 1], [], []>} : vector<8x32xf32>, vector<32x128xf32>, vector<8x128xf32> -> vector<8x128xf32>
    %53 = arith.addf %50, %52 : vector<8x128xf32>
    %c0_39 = arith.constant 0 : index
    %c0_40 = arith.constant 0 : index
    %54 = vector.load %arg11[%c0_39, %c0_40] : memref<1x128xf32, #tpu.memory_space<vmem>>, vector<1x128xf32>
    %55 = vector.broadcast %54 : vector<1x128xf32> to vector<8x128xf32>
    %56 = arith.addf %53, %55 : vector<8x128xf32>
    %57 = vector.extract_strided_slice %56 {offsets = [0, 0], sizes = [8, 32], strides = [1, 1]} : vector<8x128xf32> to vector<8x32xf32>
    %58 = arith.negf %57 : vector<8x32xf32>
    %59 = math.exp %58 : vector<8x32xf32>
    %cst_41 = arith.constant 1.000000e+00 : f32
    %60 = vector.broadcast %cst_41 : f32 to vector<8x32xf32>
    %61 = arith.addf %60, %59 : vector<8x32xf32>
    %62 = arith.divf %60, %61 : vector<8x32xf32>
    %63 = vector.extract_strided_slice %56 {offsets = [0, 32], sizes = [8, 32], strides = [1, 1]} : vector<8x128xf32> to vector<8x32xf32>
    %64 = arith.negf %63 : vector<8x32xf32>
    %65 = math.exp %64 : vector<8x32xf32>
    %cst_42 = arith.constant 1.000000e+00 : f32
    %66 = vector.broadcast %cst_42 : f32 to vector<8x32xf32>
    %67 = arith.addf %66, %65 : vector<8x32xf32>
    %68 = arith.divf %66, %67 : vector<8x32xf32>
    %69 = vector.extract_strided_slice %56 {offsets = [0, 64], sizes = [8, 32], strides = [1, 1]} : vector<8x128xf32> to vector<8x32xf32>
    %70 = math.tanh %69 : vector<8x32xf32>
    %71 = vector.extract_strided_slice %56 {offsets = [0, 96], sizes = [8, 32], strides = [1, 1]} : vector<8x128xf32> to vector<8x32xf32>
    %72 = arith.negf %71 : vector<8x32xf32>
    %73 = math.exp %72 : vector<8x32xf32>
    %cst_43 = arith.constant 1.000000e+00 : f32
    %74 = vector.broadcast %cst_43 : f32 to vector<8x32xf32>
    %75 = arith.addf %74, %73 : vector<8x32xf32>
    %76 = arith.divf %74, %75 : vector<8x32xf32>
    %77 = arith.mulf %68, %4 : vector<8x32xf32>
    %78 = arith.mulf %62, %70 : vector<8x32xf32>
    %79 = arith.addf %77, %78 : vector<8x32xf32>
    %80 = math.tanh %79 : vector<8x32xf32>
    %81 = arith.mulf %76, %80 : vector<8x32xf32>
    %c0_44 = arith.constant 0 : index
    %c0_45 = arith.constant 0 : index
    %82 = vector.load %arg15[%c0_44, %c0_45] : memref<8x32xf32, #tpu.memory_space<vmem>>, vector<8x32xf32>
    tpu.vector_store %arg15[%c0_44, %c0_45], %81 {strides = array<i32>} : memref<8x32xf32, #tpu.memory_space<vmem>>, vector<8x32xf32>,
    %c0_46 = arith.constant 0 : index
    %c0_47 = arith.constant 0 : index
    %83 = vector.load %arg16[%c0_46, %c0_47] : memref<8x32xf32, #tpu.memory_space<vmem>>, vector<8x32xf32>
    tpu.vector_store %arg16[%c0_46, %c0_47], %79 {strides = array<i32>} : memref<8x32xf32, #tpu.memory_space<vmem>>, vector<8x32xf32>,
    %c0_48 = arith.constant 0 : index
    %c0_49 = arith.constant 0 : index
    %c0_50 = arith.constant 0 : index
    %84 = vector.load %arg12[%c0_48, %c0_49, %c0_50] : memref<1x8x32xf32, #tpu.memory_space<vmem>>, vector<1x8x32xf32>
    %85 = vector.shape_cast %84 : vector<1x8x32xf32> to vector<8x32xf32>
    %86 = vector.shape_cast %81 : vector<8x32xf32> to vector<1x8x32xf32>
    tpu.vector_store %arg12[%c0_48, %c0_49, %c0_50], %86 {strides = array<i32>} : memref<1x8x32xf32, #tpu.memory_space<vmem>>, vector<1x8x32xf32>,
    return
  }
  func.func @transform_0(%arg0: i32, %arg1: i32) -> (i32, i32, i32) {
    %c0_i32 = arith.constant 0 : i32
    %c0_i32_0 = arith.constant 0 : i32
    %c0_i32_1 = arith.constant 0 : i32
    return %arg0, %c0_i32, %c0_i32_0 : i32, i32, i32
  }
  func.func @transform_1(%arg0: i32, %arg1: i32) -> (i32, i32, i32) {
    %c0_i32 = arith.constant 0 : i32
    %c0_i32_0 = arith.constant 0 : i32
    %c0_i32_1 = arith.constant 0 : i32
    return %arg0, %c0_i32, %c0_i32_0 : i32, i32, i32
  }
  func.func @transform_2(%arg0: i32, %arg1: i32) -> (i32, i32, i32) {
    %c0_i32 = arith.constant 0 : i32
    %c0_i32_0 = arith.constant 0 : i32
    return %arg1, %arg0, %c0_i32 : i32, i32, i32
  }
  func.func @transform_3(%arg0: i32, %arg1: i32) -> (i32, i32) {
    %c0_i32 = arith.constant 0 : i32
    %c0_i32_0 = arith.constant 0 : i32
    %c0_i32_1 = arith.constant 0 : i32
    return %c0_i32, %c0_i32_0 : i32, i32
  }
  func.func @transform_4(%arg0: i32, %arg1: i32) -> (i32, i32) {
    %c0_i32 = arith.constant 0 : i32
    %c0_i32_0 = arith.constant 0 : i32
    %c0_i32_1 = arith.constant 0 : i32
    return %c0_i32, %c0_i32_0 : i32, i32
  }
  func.func @transform_5(%arg0: i32, %arg1: i32) -> (i32, i32) {
    %c0_i32 = arith.constant 0 : i32
    %c0_i32_0 = arith.constant 0 : i32
    %c0_i32_1 = arith.constant 0 : i32
    return %c0_i32, %c0_i32_0 : i32, i32
  }
  func.func @transform_6(%arg0: i32, %arg1: i32) -> (i32, i32) {
    %c0_i32 = arith.constant 0 : i32
    %c0_i32_0 = arith.constant 0 : i32
    %c0_i32_1 = arith.constant 0 : i32
    return %c0_i32, %c0_i32_0 : i32, i32
  }
  func.func @transform_7(%arg0: i32, %arg1: i32) -> (i32, i32) {
    %c0_i32 = arith.constant 0 : i32
    %c0_i32_0 = arith.constant 0 : i32
    %c0_i32_1 = arith.constant 0 : i32
    return %c0_i32, %c0_i32_0 : i32, i32
  }
  func.func @transform_8(%arg0: i32, %arg1: i32) -> (i32, i32) {
    %c0_i32 = arith.constant 0 : i32
    %c0_i32_0 = arith.constant 0 : i32
    %c0_i32_1 = arith.constant 0 : i32
    return %c0_i32, %c0_i32_0 : i32, i32
  }
  func.func @transform_9(%arg0: i32, %arg1: i32) -> (i32, i32) {
    %c0_i32 = arith.constant 0 : i32
    %c0_i32_0 = arith.constant 0 : i32
    %c0_i32_1 = arith.constant 0 : i32
    return %c0_i32, %c0_i32_0 : i32, i32
  }
  func.func @transform_10(%arg0: i32, %arg1: i32) -> (i32, i32, i32) {
    %c0_i32 = arith.constant 0 : i32
    %c0_i32_0 = arith.constant 0 : i32
    return %arg1, %arg0, %c0_i32 : i32, i32, i32
  }
  func.func @transform_11(%arg0: i32, %arg1: i32) -> (i32, i32, i32) {
    %c0_i32 = arith.constant 0 : i32
    %c0_i32_0 = arith.constant 0 : i32
    return %arg1, %arg0, %c0_i32 : i32, i32, i32
  }
  func.func @transform_12(%arg0: i32, %arg1: i32) -> (i32, i32, i32) {
    %c0_i32 = arith.constant 0 : i32
    %c0_i32_0 = arith.constant 0 : i32
    return %arg1, %arg0, %c0_i32 : i32, i32, i32
  }
}

</mosaic_0001>

<bundles_post_ra>
// kernel: patch_attention_decoder.1
= control target key start
LH: loop header
LB: loop body
LE: loop exit
PB: predicated region body
PF: predicated region fallthrough
CT: control target
= control target key end

     0   :  { %s1703_s23 = smov 0   ;;  %s1705_s24 = smov 0   ;;  %s2022_s0 = inlined_call_operand.vmem [shape: f32[8,8,32], index: 0, kind: input, shape index: {}]   ;;  %s2023_s1 = inlined_call_operand.vmem [shape: f32[8,8,256], index: 1, kind: input, shape index: {}]   ;;  %s2024_s2 = inlined_call_operand.vmem [shape: f32[8,8,32], index: 2, kind: input, shape index: {}]   ;;  %s2025_s3 = inlined_call_operand.vmem [shape: f32[32,256], index: 3, kind: input, shape index: {}]   ;;  %s2026_s4 = inlined_call_operand.vmem [shape: f32[1,256], index: 4, kind: input, shape index: {}]   ;;  %s2027_s5 = inlined_call_operand.<no memory space> [shape: f32[1,1], index: 5, kind: input, shape index: {}]   ;;  %s2028_s6 = inlined_call_operand.vmem [shape: f32[32,128], index: 6, kind: input, shape index: {}]   ;;  %s2029_s7 = inlined_call_operand.vmem [shape: f32[32,128], index: 7, kind: input, shape index: {}]   ;;  %s2030_s8 = inlined_call_operand.vmem [shape: f32[32,128], index: 8, kind: input, shape index: {}]   ;;  %s2031_s9 = inlined_call_operand.vmem [shape: f32[1,128], index: 9, kind: input, shape index: {}]   ;;  %s2032_s10 = inlined_call_operand.vmem [shape: f32[8,8,32], index: 10, kind: output, shape index: {0}]   ;;  %s2033_s11 = inlined_call_operand.vmem [shape: f32[8,8,32], index: 11, kind: output, shape index: {1}]   ;;  %s2034_s12 = inlined_call_operand.vmem [shape: f32[8,8,8], index: 12, kind: output, shape index: {2}]  }
   0x1   :  { %v18_v0 = vstv %s2027_s5  ;;  %s1707_s25 = smov 0  }
   0x2   :  { %19 = vst [vmem:[#allocation4] sm:$0x1] %v18_v0 }
   0x3 LB: > { %s34_s5 = sadd.s32 1, %s1624_s24  ;;  %p1492_p0 = scmp.ge.s32.totalorder %s1628_s25, 1  ;;  %s1628_s25 = sphi %s1707_s25, %s25_s25   ;;  %s1624_s24 = sphi %s1705_s24, %s2036_s24   ;;  %s1620_s23 = sphi %s1703_s23, %s2035_s23  }
   0x4   : > { %p35_p1 = scmp.ge.s32.totalorder %s34_s5, 8  ;;  %p414_p2 = scmp.lt.s32.totalorder %s1628_s25, 9 }
   0x6   : > { %s2038_s5 = smov (%p35_p1, %s34_s5), 0  ;;  %p415_p3 = pnand %p1492_p0, %p414_p2 }
   0x7   : > { %p498_p4 = scmp.lt.s32.totalorder (!%p415_p3), %s1620_s23, 7  ;;  %p1497_p5 = scmp.ne.s32.totalorder (!%p415_p3), %s1620_s23, 0 }
   0x8   : > { %418 = sbr.rel (%p415_p3) target bundleno = 1600 (0x640), region = 60 }
   0xd   : > { %s499_s26 = scalar_select %p498_p4, %s1620_s23, 7 }
   0xe   : > { %529 = sbr.rel (%p1497_p5) target bundleno = 22 (0x16), region = 64 }
   0xf   : > { %s1721_s27 = sshll.u32 %s499_s26, 3 }
  0x10   : > { %s504_s30 = scalar_lea.vmem %s2024_s2, %s1721_s27  ;;  %s511_s15 = scalar_lea.vmem %s2032_s10, %s1721_s27 }
  0x11   : > { %s518_s18 = scalar_lea.vmem %s2033_s11, %s1721_s27  ;;  %s525_s21 = scalar_lea.vmem %s2034_s12, %s1721_s27 }
  0x13   : > { %vm530_vm0 = vcmask 261120   ;;  %v1630_v1 = vmov 0.0  }
  0x14   : > { %531 = vst.msk [vmem:[#allocation2] sm:$0xff] %vm530_vm0, %v1630_v1 }
  0x15   : > { %532 = vst.msk [vmem:[#allocation3] sm:$0xff] %vm530_vm0, %v1630_v1 }
  0x16 PF: > { %v542_v2 = vld [vmem:[%s2025_s3 + $0x38] sm:$0xff]  ;;  %v541_v3 = vld [vmem:[%s2025_s3 + $0x30] sm:$0xff]  ;;  %v540_v4 = vld [vmem:[%s2025_s3 + $0x28] sm:$0xff]  ;;  %vm543_vm1 = vcmask 261120   ;;  %vm606_vm2 = vcmask 1040384   ;;  %vm614_vm3 = vcmask 1043459  }
  0x17   : > { %579 = vmatpush.msra.mxu1 %v542_v2  ;;  %559 = vmatpush.msra.mxu0 %v541_v3  ;;  %v539_v5 = vld [vmem:[%s2025_s3 + $0x20] sm:$0xff]  ;;  %v538_v6 = vld [vmem:[%s2025_s3 + $0x18] sm:$0xff]  ;;  %v537_v7 = vld [vmem:[%s2025_s3 + $0x10] sm:$0xff]  ;;  %vm611_vm4 = vcmask 1042434   ;;  %vm608_vm5 = vcmask 1041409   ;;  %vm617_vm6 = vcmask 1044484  }
  0x18   : > { %v536_v8 = vld [vmem:[%s2025_s3 + $0x8] sm:$0xff]  ;;  %v535_v9 = vld [vmem:[%s2025_s3] sm:$0xff]  ;;  %vm620_vm7 = vcmask 1045509   ;;  %vm623_vm8 = vcmask 1046534   ;;  %v593_v26 = vld [vmem:[%s2023_s1 + $0x30] sm:$0xff]  ;;  %vm626_vm9 = vcmask 1046528  }
  0x19   : > { %580 = vmatpush.msra.mxu1 %v540_v4  ;;  %560 = vmatpush.msra.mxu0 %v539_v5  ;;  %v693_v11 = vld [vmem:[%s2026_s4] sm:$0x3]  ;;  %v588_v17 = vld [vmem:[%s2023_s1 + $0x8] sm:$0xff]  ;;  %v594_v27 = vld [vmem:[%s2023_s1 + $0x38] sm:$0xff]  ;;  %vm778_vm10 = vcmask 1047559   ;;  %vm781_vm11 = vcmask 64512  }
  0x1a   : > { %v1772_v15 = vperm.slane %v693_v11, 0  ;;  %v587_v16 = vld [vmem:[%s2023_s1] sm:$0xff]  ;;  %v592_v37 = vld [vmem:[%s2023_s1 + $0x28] sm:$0xff]  ;;  %v589_v40 = vld [vmem:[%s2023_s1 + $0x10] sm:$0xff]  ;;  %v1810_v57 = vperm.slane %v693_v11, 1  ;;  %s1632_s13 = smov 32  }
  0x1b   : > { %581 = vmatpush.msra.mxu1 %v538_v6  ;;  %561 = vmatpush.msra.mxu0 %v537_v7  ;;  %v1763_v10 = vld [vmem:[#allocation2] sm:$0xff]  ;;  %v590_v45 = vld [vmem:[%s2023_s1 + $0x18] sm:$0xff]  ;;  %v596_v51 = vld [vmem:[%s2023_s1 + $0x48] sm:$0xff]  ;;  %s1633_s17 = smov 64  }
  0x1c   : > { %v591_v36 = vld [vmem:[%s2023_s1 + $0x20] sm:$0xff]  ;;  %v597_v61 = vld [vmem:[%s2023_s1 + $0x50] sm:$0xff]  ;;  %v598_v1 = vld [vmem:[%s2023_s1 + $0x58] sm:$0xff] }
  0x1d   : > { %582 = vmatpush.msra.mxu1 %v536_v8  ;;  %562 = vmatpush.msra.mxu0 %v535_v9  ;;  %v595_v49 = vld [vmem:[%s2023_s1 + $0x40] sm:$0xff]  ;;  %v600_v11 = vld [vmem:[%s2023_s1 + $0x68] sm:$0xff] }
  0x1e   : > { %1499 = vmatmul.msk.f32.vlgmr.msra.gmra.mxu1 %vm543_vm1, %v1763_v10  ;;  %1498 = vmatmul.msk.f32.vlgmr.msra.gmra.mxu0 %vm543_vm1, %v1763_v10  ;;  %v599_v5 = vld [vmem:[%s2023_s1 + $0x60] sm:$0xff] }
  0x9b   : > { %v584_v12 = vpop.f32.mrf.mxu1  ;;  %v564_v13 = vpop.f32.mrf.mxu0 }
  0x9c   : > { %v605_v14 = vrot.slane %v584_v12, 7 }
  0x9e   : > { %v607_v18 = vsel %vm606_vm2, %v564_v13, %v605_v14  ;;  %v615_v19 = vsel %vm614_vm3, %v564_v13, %v605_v14  ;;  %v612_v20 = vsel %vm611_vm4, %v564_v13, %v605_v14  ;;  %v609_v21 = vsel %vm608_vm5, %v564_v13, %v605_v14 }
  0x9f   : > { %v629_v22 = vperm.slane %v607_v18, 0  ;;  %v630_v23 = vperm.slane %v607_v18, 1  ;;  %v616_v24 = vrot.slane %v615_v19, 3  ;;  %v613_v25 = vrot.slane %v612_v20, 2 }
  0xa0   : > { %v610_v28 = vrot.slane %v609_v21, 1  ;;  %v618_v29 = vsel %vm617_vm6, %v564_v13, %v605_v14  ;;  %v621_v30 = vsel %vm620_vm7, %v564_v13, %v605_v14  ;;  %v624_v31 = vsel %vm623_vm8, %v564_v13, %v605_v14 }
  0xa1   : > { %v661_v32 = vadd.f32 %v629_v22, %v587_v16  ;;  %v662_v33 = vadd.f32 %v630_v23, %v588_v17  ;;  %v635_v34 = vperm.slane %v616_v24, 0  ;;  %v636_v35 = vperm.slane %v616_v24, 1 }
  0xa2   : > { %v633_v38 = vperm.slane %v613_v25, 0  ;;  %v634_v39 = vperm.slane %v613_v25, 1  ;;  %v631_v41 = vperm.slane %v610_v28, 0  ;;  %v632_v42 = vperm.slane %v610_v28, 1 }
  0xa3   : > { %1548 = vtanh.f32 %v661_v32  ;;  %v667_v43 = vadd.f32 %v635_v34, %v593_v26  ;;  %v668_v44 = vadd.f32 %v636_v35, %v594_v27  ;;  %v619_v46 = vrot.slane %v618_v29, 4 }
  0xa4   : > { %1550 = vtanh.f32 %v662_v33  ;;  %v665_v47 = vadd.f32 %v633_v38, %v591_v36  ;;  %v666_v48 = vadd.f32 %v634_v39, %v592_v37  ;;  %v663_v50 = vadd.f32 %v631_v41, %v589_v40  ;;  %v602_v36 = vld [vmem:[%s2023_s1 + $0x78] sm:$0xff] }
  0xa5   : > { %1552 = vtanh.f32 %v667_v43  ;;  %v637_v52 = vperm.slane %v619_v46, 0  ;;  %v638_v53 = vperm.slane %v619_v46, 1  ;;  %v664_v54 = vadd.f32 %v632_v42, %v590_v45 }
  0xa6   : > { %1554 = vtanh.f32 %v668_v44  ;;  %v622_v55 = vrot.slane %v621_v30, 5  ;;  %v625_v56 = vrot.slane %v624_v31, 6  ;;  %v627_v59 = vsel %vm626_vm9, %v605_v14, %v564_v13  ;;  %v601_v30 = vld [vmem:[%s2023_s1 + $0x70] sm:$0xff] }
  0xa7   : > { %1556 = vtanh.f32 %v665_v47  ;;  %v669_v58 = vadd.f32 %v637_v52, %v595_v49  ;;  %v670_v60 = vadd.f32 %v638_v53, %v596_v51  ;;  %v628_v12 = vrot.slane %v627_v59, 7 }
  0xa8   : > { %1558 = vtanh.f32 %v666_v48  ;;  %v639_v62 = vperm.slane %v622_v55, 0  ;;  %v640_v63 = vperm.slane %v622_v55, 1  ;;  %v641_v2 = vperm.slane %v625_v56, 0 }
  0xa9   : > { %v1549_v0 = vpop.eup %1548  ;;  %1560 = vtanh.f32 %v663_v50  ;;  %v642_v6 = vperm.slane %v625_v56, 1  ;;  %v1631_v24 = vmov 0   ;;  %v643_v28 = vperm.slane %v628_v12, 0 }
  0xaa   : > { %v1551_v3 = vpop.eup %1550  ;;  %v699_v4 = vmul.f32 %v1549_v0, %v1772_v15  ;;  %1562 = vtanh.f32 %v664_v54  ;;  %v671_v9 = vadd.f32 %v639_v62, %v597_v61  ;;  %v672_v16 = vadd.f32 %v640_v63, %v598_v1  ;;  %1543 = vset.pattern.permute.xlu1 %v1631_v24  ;;  %1545 = vset.pattern.permute.xlu2 %v1631_v24 }
  0xab   : > { %v1553_v7 = vpop.eup %1552  ;;  %v700_v8 = vmul.f32 %v1551_v3, %v1810_v57  ;;  %1564 = vtanh.f32 %v669_v58  ;;  %v673_v20 = vadd.f32 %v641_v2, %v599_v5  ;;  %v674_v23 = vadd.f32 %v642_v6, %v600_v11  ;;  %1544 = vset.pattern.permute.xlu0 %v1631_v24 }
  0xac   : > { %v1555_v13 = vpop.eup %1554  ;;  %v705_v14 = vmul.f32 %v1553_v7, %v1772_v15  ;;  %1566 = vtanh.f32 %v670_v60  ;;  %v644_v31 = vperm.slane %v628_v12, 1  ;;  %v675_v40 = vadd.f32 %v643_v28, %v601_v30  ;;  %v1546_v60 = vld [vmem:[#allocation4] ss:$0 sm:$0xff] }
  0xad   : > { %v1557_v17 = vpop.eup %1556  ;;  %v715_v18 = vadd.f32 %v700_v8, %v699_v4  ;;  %v706_v19 = vmul.f32 %v1555_v13, %v1810_v57  ;;  %1568 = vtanh.f32 %v671_v9  ;;  %v762_v3 = vlaneseq }
  0xae   : > { %v1559_v21 = vpop.eup %1558  ;;  %v703_v22 = vmul.f32 %v1557_v17, %v1772_v15  ;;  %1570 = vtanh.f32 %v672_v16  ;;  %v676_v41 = vadd.f32 %v644_v31, %v602_v36 }
  0xaf   : > { %v1561_v25 = vpop.eup %1560  ;;  %716 = vadd.xlane.f32.xlu0 %v715_v18  ;;  %v724_v26 = vadd.f32 %v706_v19, %v705_v14  ;;  %v704_v27 = vmul.f32 %v1559_v21, %v1810_v57  ;;  %1572 = vtanh.f32 %v673_v20  ;;  %v1846_v4 = vand.u32 127, %v762_v3 }
  0xb0   : > { %v1563_v29 = vpop.eup %1562  ;;  %v701_v34 = vmul.f32 %v1561_v25, %v1772_v15  ;;  %1574 = vtanh.f32 %v674_v23 }
  0xb1   : > { %v1565_v32 = vpop.eup %1564  ;;  %725 = vadd.xlane.f32.xlu2 %v724_v26  ;;  %v721_v33 = vadd.f32 %v704_v27, %v703_v22  ;;  %v702_v35 = vmul.f32 %v1563_v29, %v1810_v57  ;;  %1576 = vtanh.f32 %v675_v40 }
  0xb2   : > { %v1567_v37 = vpop.eup %1566  ;;  %v707_v38 = vmul.f32 %v1565_v32, %v1772_v15  ;;  %1578 = vtanh.f32 %v676_v41 }
  0xb3   : > { %722 = vadd.xlane.f32.xlu1 %v721_v33  ;;  %v708_v39 = vmul.f32 %v1567_v37, %v1810_v57  ;;  %v1569_v42 = vpop.eup %1568  ;;  %v718_v43 = vadd.f32 %v702_v35, %v701_v34 }
  0xb4   : > { %v1571_v44 = vpop.eup %1570  ;;  %v709_v48 = vmul.f32 %v1569_v42, %v1772_v15 }
  0xb5   : > { %v1573_v45 = vpop.eup %1572  ;;  %v727_v46 = vadd.f32 %v708_v39, %v707_v38  ;;  %v710_v49 = vmul.f32 %v1571_v44, %v1810_v57 }
  0xb6   : > { %v1575_v47 = vpop.eup %1574  ;;  %v711_v50 = vmul.f32 %v1573_v45, %v1772_v15 }
  0xb7   : > { %719 = vadd.xlane.f32.xlu0 %v718_v43  ;;  %v712_v51 = vmul.f32 %v1575_v47, %v1810_v57  ;;  %v1577_v52 = vpop.eup %1576  ;;  %v730_v53 = vadd.f32 %v710_v49, %v709_v48 }
  0xb8   : > { %v1579_v54 = vpop.eup %1578  ;;  %v713_v56 = vmul.f32 %v1577_v52, %v1772_v15 }
  0xb9   : > { %728 = vadd.xlane.f32.xlu2 %v727_v46  ;;  %v733_v55 = vadd.f32 %v712_v51, %v711_v50  ;;  %v714_v58 = vmul.f32 %v1579_v54, %v1810_v57 }
  0xbb   : > { %v736_v59 = vadd.f32 %v714_v58, %v713_v56 }
  0xbf   : > { %731 = vadd.xlane.f32.xlu0 %v730_v53 }
  0xc1   : > { %734 = vadd.xlane.f32.xlu2 %v733_v55 }
  0xc7   : > { %737 = vadd.xlane.f32.xlu0 %v736_v59 }
  0xcc   : > { %743 = vperm.xlu1 %1543, %v1546_v60  }
 0x122   : > { %v717_v61 = vpop.xlane.xlu0 %716 }
 0x124   : > { %v726_v62 = vpop.xlane.xlu2 %725 }
 0x126   : > { %v723_v0 = vpop.xlane.xlu1 %722 }
 0x12a   : > { %v720_v63 = vpop.xlane.xlu0 %719 }
 0x12c   : > { %v729_v1 = vpop.xlane.xlu2 %728 }
 0x132   : > { %v732_v2 = vpop.xlane.xlu0 %731 }
 0x134   : > { %v735_v57 = vpop.xlane.xlu2 %734 }
 0x13a   : > { %v738_v16 = vpop.xlane.xlu0 %737 }
 0x13e   : > { %v744_v5 = vpop.permute.xlu1 %743 }
 0x13f   : > { %v746_v6 = vadd.f32 %v744_v5, %v717_v61  ;;  %v747_v7 = vadd.f32 %v744_v5, %v720_v63  ;;  %v748_v8 = vadd.f32 %v744_v5, %v723_v0  ;;  %v749_v15 = vadd.f32 %v744_v5, %v726_v62 }
 0x140   : > { %v750_v9 = vadd.f32 %v744_v5, %v729_v1  ;;  %v751_v11 = vadd.f32 %v744_v5, %v732_v2  ;;  %v752_v17 = vadd.f32 %v744_v5, %v735_v57  ;;  %v753_v18 = vadd.f32 %v744_v5, %v738_v16 }
 0x141   : > { %v764_v12 = vperm.slane %v746_v6, %v1846_v4  ;;  %v765_v13 = vperm.slane %v747_v7, %v1846_v4  ;;  %v766_v14 = vperm.slane %v748_v8, %v1846_v4  ;;  %v767_v19 = vperm.slane %v749_v15, %v1846_v4 }
 0x142   : > { %v768_v21 = vperm.slane %v750_v9, %v1846_v4  ;;  %v769_v23 = vperm.slane %v751_v11, %v1846_v4  ;;  %v770_v25 = vperm.slane %v752_v17, %v1846_v4  ;;  %v771_v27 = vperm.slane %v753_v18, %v1846_v4 }
 0x143   : > { %v772_v20 = vsel %vm608_vm5, %v765_v13, %v764_v12 }
 0x144   : > { %v773_v22 = vsel %vm611_vm4, %v766_v14, %v772_v20 }
 0x145   : > { %v774_v24 = vsel %vm614_vm3, %v767_v19, %v773_v22 }
 0x146   : > { %v775_v26 = vsel %vm617_vm6, %v768_v21, %v774_v24 }
 0x147   : > { %v776_v28 = vsel %vm620_vm7, %v769_v23, %v775_v26 }
 0x148   : > { %v777_v29 = vsel %vm623_vm8, %v770_v25, %v776_v28 }
 0x149   : > { %v779_v30 = vsel %vm778_vm10, %v771_v27, %v777_v29 }
 0x14a   : > { %v782_v31 = vsel %vm781_vm11, %v779_v30, -inf }
 0x14b   : > { %783 = vmax.xlane.f32.xlu2 %v782_v31 }
 0x1be   : > { %v784_v32 = vpop.xlane.xlu2 %783 }
 0x1bf   : > { %v788_v33 = vperm.slane %v784_v32, 2  ;;  %v787_v34 = vperm.slane %v784_v32, 1  ;;  %v786_v35 = vperm.slane %v784_v32, 0  ;;  %v789_v39 = vperm.slane %v784_v32, 3 }
 0x1c0   : > { %v791_v40 = vperm.slane %v784_v32, 5  ;;  %v790_v47 = vperm.slane %v784_v32, 4  ;;  %v793_v49 = vperm.slane %v784_v32, 7  ;;  %v792_v56 = vperm.slane %v784_v32, 6 }
 0x1c1   : > { %v804_v36 = vsub.f32 %v748_v8, %v788_v33  ;;  %v803_v37 = vsub.f32 %v747_v7, %v787_v34  ;;  %v802_v38 = vsub.f32 %v746_v6, %v786_v35  ;;  %v805_v44 = vsub.f32 %v749_v15, %v789_v39 }
 0x1c2   : > { %v807_v45 = vsub.f32 %v751_v11, %v791_v40  ;;  %v806_v53 = vsub.f32 %v750_v9, %v790_v47  ;;  %v809_v54 = vsub.f32 %v753_v18, %v793_v49  ;;  %v808_v61 = vsub.f32 %v752_v17, %v792_v56  ;;  %v958_v49 = vld [vmem:[%s2022_s0 + $0x18] sm:$0xff] }
 0x1c3   : > { %v814_v41 = vmul.f32 1.442695, %v804_v36  ;;  %v812_v42 = vmul.f32 1.442695, %v803_v37  ;;  %v810_v43 = vmul.f32 1.442695, %v802_v38 }
 0x1c4   : > { %v816_v46 = vmul.f32 1.442695, %v805_v44  ;;  %v820_v48 = vmul.f32 1.442695, %v807_v45  ;;  %v818_v55 = vmul.f32 1.442695, %v806_v53 }
 0x1c5   : > { %1580 = vpow2.f32 %v814_v41  ;;  %v824_v58 = vmul.f32 1.442695, %v809_v54  ;;  %v822_v62 = vmul.f32 1.442695, %v808_v61 }
 0x1c6   : > { %1582 = vpow2.f32 %v812_v42 }
 0x1c7   : > { %1584 = vpow2.f32 %v810_v43 }
 0x1c8   : > { %1586 = vpow2.f32 %v816_v46 }
 0x1c9   : > { %1588 = vpow2.f32 %v820_v48  ;;  %v956_v48 = vld [vmem:[%s2022_s0 + $0x8] sm:$0xff] }
 0x1ca   : > { %1590 = vpow2.f32 %v818_v55  ;;  %1002 = vmatpush.msra.mxu3 %v956_v48  ;;  %v962_v55 = vld [vmem:[%s2022_s0 + $0x38] sm:$0xff] }
 0x1cb   : > { %v1864_v50 = vpop.eup %1580  ;;  %1592 = vpow2.f32 %v824_v58 }
 0x1cc   : > { %v1583_v51 = vpop.eup %1582  ;;  %841 = vperm.xlu1 %1543, %v1864_v50   ;;  %1594 = vpow2.f32 %v822_v62  ;;  %1046 = vmatpush.msrb.mxu3 %v958_v49 }
 0x1cd   : > { %v1585_v52 = vpop.eup %1584  ;;  %838 = vperm.xlu2 %1545, %v1583_v51  }
 0x1ce   : > { %835 = vperm.xlu0 %1544, %v1585_v52   ;;  %v1587_v59 = vpop.eup %1586 }
 0x1cf   : > { %v1867_v60 = vpop.eup %1588 }
 0x1d0   : > { %v1591_v63 = vpop.eup %1590 }
 0x1d1   : > { %v1593_v0 = vpop.eup %1592 }
 0x1d2   : > { %v1595_v1 = vpop.eup %1594 }
 0x1d4   : > { %844 = vperm.xlu1 %1543, %v1587_v59  }
 0x1d5   : > { %850 = vperm.xlu2 %1545, %v1867_v60  }
 0x1dc   : > { %847 = vperm.xlu1 %1543, %v1591_v63  }
 0x1dd   : > { %856 = vperm.xlu2 %1545, %v1593_v0  }
 0x1e4   : > { %853 = vperm.xlu1 %1543, %v1595_v1  }
 0x227   : > { %v839_v3 = vpop.permute.xlu2 %838 }
 0x228   : > { %v859_v15 = vperm.slane %v839_v3, %v1846_v4 }
 0x22f   : > { %v851_v7 = vpop.permute.xlu2 %850 }
 0x230   : > { %v863_v19 = vperm.slane %v851_v7, %v1846_v4 }
 0x237   : > { %v857_v17 = vpop.permute.xlu2 %856 }
 0x238   : > { %v865_v22 = vperm.slane %v857_v17, %v1846_v4  ;;  %v1219_v17 = vld [vmem:[%s2030_s8 + $0x10] sm:$0xff] }
 0x23e   : > { %v842_v2 = vpop.permute.xlu1 %841 }
 0x23f   : > { %v860_v57 = vperm.slane %v842_v2, %v1846_v4  ;;  %v961_v2 = vld [vmem:[%s2022_s0 + $0x30] sm:$0xff] }
 0x240   : > { %v836_v6 = vpop.permute.xlu0 %835 }
 0x241   : > { %v858_v8 = vperm.slane %v836_v6, %v1846_v4 }
 0x243   : > { %v866_v11 = vsel %vm608_vm5, %v859_v15, %v858_v8 }
 0x244   : > { %v867_v14 = vsel %vm611_vm4, %v860_v57, %v866_v11 }
 0x246   : > { %v845_v5 = vpop.permute.xlu1 %844 }
 0x247   : > { %v861_v12 = vperm.slane %v845_v5, %v1846_v4 }
 0x249   : > { %v868_v16 = vsel %vm614_vm3, %v861_v12, %v867_v14 }
 0x24e   : > { %v848_v9 = vpop.permute.xlu1 %847 }
 0x24f   : > { %v862_v13 = vperm.slane %v848_v9, %v1846_v4 }
 0x251   : > { %v869_v18 = vsel %vm617_vm6, %v862_v13, %v868_v16 }
 0x252   : > { %v870_v23 = vsel %vm620_vm7, %v863_v19, %v869_v18  ;;  %v1171_v18 = vld [vmem:[%s2029_s7 + $0x18] sm:$0xff] }
 0x253   : > { %v1167_v19 = vld [vmem:[%s2028_s6 + $0x18] sm:$0xff] }
 0x256   : > { %v854_v20 = vpop.permute.xlu1 %853 }
 0x257   : > { %v864_v21 = vperm.slane %v854_v20, %v1846_v4  ;;  %v1218_v20 = vld [vmem:[%s2030_s8 + $0x8] sm:$0xff] }
 0x259   : > { %v871_v24 = vsel %vm623_vm8, %v864_v21, %v870_v23  ;;  %v1170_v21 = vld [vmem:[%s2029_s7 + $0x10] sm:$0xff]  ;;  %v1217_v23 = vld [vmem:[%s2030_s8] sm:$0xff] }
 0x25a   : > { %v872_v25 = vsel %vm778_vm10, %v865_v22, %v871_v24  ;;  %v1166_v22 = vld [vmem:[%s2028_s6 + $0x10] sm:$0xff]  ;;  %v1169_v24 = vld [vmem:[%s2029_s7 + $0x8] sm:$0xff] }
 0x25b   : > { %v874_v26 = vsel %vm781_vm11, %v872_v25, 0.0  ;;  %v1165_v25 = vld [vmem:[%s2028_s6 + $0x8] sm:$0xff] }
 0x25c   : > { %875 = vadd.xlane.f32.xlu1 %v874_v26  ;;  %v1168_v26 = vld [vmem:[%s2029_s7] sm:$0xff] }
 0x2cf   : > { %v876_v27 = vpop.xlane.xlu1 %875 }
 0x2d0   : > { %1596 = vrcp.f32 %v876_v27 }
 0x2d6   : > { %v1597_v28 = vpop.eup %1596 }
 0x2d7   : > { %v878_v29 = vmul.f32 %v1597_v28, %v876_v27  ;;  %v1164_v27 = vld [vmem:[%s2028_s6] sm:$0xff] }
 0x2d9   : > { %v879_v30 = vsub.f32 2.0, %v878_v29  ;;  %v534_v29 = vld [vmem:[#allocation3] sm:$0xff] }
 0x2db   : > { %v880_v31 = vmul.f32 %v1597_v28, %v879_v30  ;;  %v1163_v28 = vld [vmem:[%s504_s30] sm:$0xff] }
 0x2dd   : > { %v883_v32 = vperm.slane %v880_v31, 1  ;;  %v882_v33 = vperm.slane %v880_v31, 0  ;;  %v885_v36 = vperm.slane %v880_v31, 3  ;;  %v884_v37 = vperm.slane %v880_v31, 2 }
 0x2de   : > { %v889_v40 = vperm.slane %v880_v31, 7  ;;  %v888_v41 = vperm.slane %v880_v31, 6  ;;  %v887_v44 = vperm.slane %v880_v31, 5  ;;  %v886_v45 = vperm.slane %v880_v31, 4 }
 0x2df   : > { %v899_v34 = vmul.f32 %v1583_v51, %v883_v32  ;;  %v898_v35 = vmul.f32 %v1585_v52, %v882_v33  ;;  %v901_v38 = vmul.f32 %v1587_v59, %v885_v36  ;;  %v900_v39 = vmul.f32 %v1864_v50, %v884_v37  ;;  %v955_v50 = vld [vmem:[%s2022_s0] sm:$0xff]  ;;  %v960_v51 = vld [vmem:[%s2022_s0 + $0x28] sm:$0xff]  ;;  %v957_v52 = vld [vmem:[%s2022_s0 + $0x10] sm:$0xff] }
 0x2e0   : > { %v905_v42 = vmul.f32 %v1593_v0, %v889_v40  ;;  %v904_v43 = vmul.f32 %v1595_v1, %v888_v41  ;;  %v903_v46 = vmul.f32 %v1867_v60, %v887_v44  ;;  %v902_v47 = vmul.f32 %v1591_v63, %v886_v45  ;;  %980 = vmatpush.msra.mxu2 %v955_v50  ;;  %v959_v59 = vld [vmem:[%s2022_s0 + $0x20] sm:$0xff] }
 0x2e1   : > { %918 = vperm.xlu2 %1545, %v899_v34   ;;  %915 = vperm.xlu0 %1544, %v898_v35  }
 0x2e2   : > { %1090 = vmatpush.msrb.mxu1 %v960_v51  ;;  %1024 = vmatpush.msrb.mxu2 %v957_v52 }
 0x2e3   : > { %1068 = vmatpush.msrb.mxu0 %v959_v59 }
 0x2e4   : > { %1209 = vmatpush.msra.mxu1 %v1167_v19 }
 0x2e5   : > { %1186 = vmatpush.msra.mxu0 %v1171_v18 }
 0x2e6   : > { %1210 = vmatpush.msra.mxu1 %v1166_v22 }
 0x2e7   : > { %1187 = vmatpush.msra.mxu0 %v1170_v21 }
 0x2e8   : > { %1211 = vmatpush.msra.mxu1 %v1165_v25 }
 0x2e9   : > { %924 = vperm.xlu2 %1545, %v901_v38   ;;  %921 = vperm.xlu0 %1544, %v900_v39  }
 0x2ea   : > { %1188 = vmatpush.msra.mxu0 %v1169_v24  ;;  %1212 = vmatpush.msra.mxu1 %v1164_v27 }
 0x2ec   : > { %1189 = vmatpush.msra.mxu0 %v1168_v26 }
 0x2f1   : > { %936 = vperm.xlu2 %1545, %v905_v42   ;;  %933 = vperm.xlu0 %1544, %v904_v43  }
 0x2f9   : > { %930 = vperm.xlu2 %1545, %v903_v46   ;;  %927 = vperm.xlu0 %1544, %v902_v47  }
 0x301   : > { %1268 = vrot.lane.b32.xlu2 %v534_v29, %s1632_s13 }
 0x33b   : > { %v919_v53 = vpop.permute.xlu2 %918 }
 0x33c   : > { %v939_v54 = vperm.slane %v919_v53, %v1846_v4 }
 0x33e   : > { %1501 = vmatmul.msk.f32.vlgmr.msra.gmra.mxu3 %vm781_vm11, %v939_v54 }
 0x33f   : > { %1134 = vmatpush.msra.mxu3 %v962_v55  ;;  %v1547_v55 = vld [vmem:[%s2031_s9] ss:$0 sm:$0xff] }
 0x343   : > { %v925_v56 = vpop.permute.xlu2 %924 }
 0x344   : > { %v941_v58 = vperm.slane %v925_v56, %v1846_v4 }
 0x346   : > { %1503 = vmatmul.msk.f32.vlgmr.msrb.gmra.mxu3 %vm781_vm11, %v941_v58 }
 0x34b   : > { %v937_v60 = vpop.permute.xlu2 %936 }
 0x34c   : > { %v945_v61 = vperm.slane %v937_v60, %v1846_v4 }
 0x34e   : > { %1507 = vmatmul.msk.f32.vlgmr.msra.gmra.mxu3 %vm781_vm11, %v945_v61 }
 0x353   : > { %v931_v62 = vpop.permute.xlu2 %930  ;;  %v916_v63 = vpop.permute.xlu0 %915 }
 0x354   : > { %v943_v0 = vperm.slane %v931_v62, %v1846_v4  ;;  %v938_v1 = vperm.slane %v916_v63, %v1846_v4 }
 0x356   : > { %1500 = vmatmul.msk.f32.vlgmr.msra.gmra.mxu2 %vm781_vm11, %v938_v1  ;;  %1505 = vmatmul.msk.f32.vlgmr.msrb.gmra.mxu1 %vm781_vm11, %v943_v0  ;;  %v946_v8 = vsel %vm608_vm5, %v939_v54, %v938_v1 }
 0x357   : > { %1112 = vmatpush.msra.mxu2 %v961_v2 }
 0x35b   : > { %v922_v3 = vpop.permute.xlu0 %921 }
 0x35c   : > { %v940_v5 = vperm.slane %v922_v3, %v1846_v4 }
 0x35e   : > { %1502 = vmatmul.msk.f32.vlgmr.msrb.gmra.mxu2 %vm781_vm11, %v940_v5  ;;  %v947_v15 = vsel %vm611_vm4, %v940_v5, %v946_v8  ;;  %1509 = vmatmul.msk.f32.vlgmr.msra.gmra.mxu1 %vm543_vm1, %v1163_v28 }
 0x35f   : > { %v948_v11 = vsel %vm614_vm3, %v941_v58, %v947_v15 }
 0x363   : > { %v934_v6 = vpop.permute.xlu0 %933 }
 0x364   : > { %v944_v7 = vperm.slane %v934_v6, %v1846_v4 }
 0x366   : > { %1506 = vmatmul.msk.f32.vlgmr.msra.gmra.mxu2 %vm781_vm11, %v944_v7 }
 0x36b   : > { %v928_v9 = vpop.permute.xlu0 %927 }
 0x36c   : > { %v942_v57 = vperm.slane %v928_v9, %v1846_v4  ;;  %v1220_v4 = vld [vmem:[%s2030_s8 + $0x18] sm:$0xff] }
 0x36d   : > { %1233 = vmatpush.msrb.mxu2 %v1220_v4 }
 0x36e   : > { %v949_v12 = vsel %vm617_vm6, %v942_v57, %v948_v11  ;;  %1504 = vmatmul.msk.f32.vlgmr.msrb.gmra.mxu0 %vm781_vm11, %v942_v57  ;;  %v1269_v11 = vpop.permute.xlu2 %1268 }
 0x36f   : > { %v950_v13 = vsel %vm620_vm7, %v943_v0, %v949_v12  ;;  %1234 = vmatpush.msrb.mxu2 %v1219_v17 }
 0x370   : > { %v951_v14 = vsel %vm623_vm8, %v944_v7, %v950_v13 }
 0x371   : > { %v952_v16 = vsel %vm778_vm10, %v945_v61, %v951_v14  ;;  %1235 = vmatpush.msrb.mxu2 %v1218_v20 }
 0x372   : > { %954 = vst.msk [vmem:[%s525_s21] sm:$0xff] %vm781_vm11, %v952_v16 }
 0x373   : > { %1236 = vmatpush.msrb.mxu2 %v1217_v23 }
 0x374   : > { %1510 = vmatmul.msk.f32.vlgmr.msrb.gmra.mxu2 %vm543_vm1, %v1763_v10 }
 0x3c1   : > { %v1004_v30 = vpop.f32.mrf.mxu3 }
 0x3c2   : > { %v1147_v35 = vrot.slane %v1004_v30, 7 }
 0x3c9   : > { %v1048_v33 = vpop.f32.mrf.mxu3 }
 0x3ca   : > { %v1151_v10 = vrot.slane %v1048_v33, 5 }
 0x3d1   : > { %v1136_v41 = vpop.f32.mrf.mxu3 }
 0x3d2   : > { %v1159_v47 = vrot.slane %v1136_v41, 1 }
 0x3d3   : > { %v1092_v37 = vpop.f32.mrf.mxu1 }
 0x3d4   : > { %v1155_v43 = vrot.slane %v1092_v37, 3 }
 0x3d9   : > { %v982_v31 = vpop.f32.mrf.mxu2 }
 0x3da   : > { %v1148_v36 = vsel %vm608_vm5, %v1147_v35, %v982_v31 }
 0x3db   : > { %v1214_v51 = vpop.f32.mrf.mxu1 }
 0x3e1   : > { %v1026_v32 = vpop.f32.mrf.mxu2 }
 0x3e2   : > { %v1149_v34 = vrot.slane %v1026_v32, 6 }
 0x3e4   : > { %v1150_v38 = vsel %vm611_vm4, %v1149_v34, %v1148_v36 }
 0x3e5   : > { %v1152_v44 = vsel %vm614_vm3, %v1151_v10, %v1150_v38 }
 0x3e9   : > { %v1114_v39 = vpop.f32.mrf.mxu2 }
 0x3ea   : > { %v1157_v45 = vrot.slane %v1114_v39, 2 }
 0x3eb   : > { %v1070_v40 = vpop.f32.mrf.mxu0 }
 0x3ec   : > { %v1153_v42 = vrot.slane %v1070_v40, 4 }
 0x3ee   : > { %v1154_v46 = vsel %vm617_vm6, %v1153_v42, %v1152_v44 }
 0x3ef   : > { %v1156_v48 = vsel %vm620_vm7, %v1155_v43, %v1154_v46 }
 0x3f0   : > { %v1158_v49 = vsel %vm623_vm8, %v1157_v45, %v1156_v48 }
 0x3f1   : > { %v1160_v50 = vsel %vm778_vm10, %v1159_v47, %v1158_v49 }
 0x3f2   : > { %1162 = vst.msk [vmem:[%s518_s18] sm:$0xff] %vm543_vm1, %v1160_v50  ;;  %1508 = vmatmul.msk.f32.vlgmr.msra.gmra.mxu0 %vm543_vm1, %v1160_v50  ;;  %s1634_s18 = smov 96  }
 0x3f7   : > { %v1238_v53 = vpop.f32.mrf.mxu2 }
 0x46f   : > { %v1191_v52 = vpop.f32.mrf.mxu0 }
 0x470   : > { %v1215_v54 = vadd.f32 %v1214_v51, %v1191_v52 }
 0x472   : > { %v1241_v56 = vadd.f32 %v1238_v53, %v1215_v54 }
 0x474   : > { %v1246_v58 = vadd.f32 %v1547_v55, %v1241_v56 }
 0x476   : > { %1598 = vtanh.f32 %v1246_v58  ;;  %v1511_v60 = vmul.f32 -1.442695, %v1246_v58 }
 0x478   : > { %1600 = vpow2.f32 %v1511_v60 }
 0x47c   : > { %v1599_v59 = vpop.eup %1598 }
 0x47d   : > { %1273 = vrot.lane.b32.xlu0 %v1599_v59, %s1633_s17 }
 0x47e   : > { %v1601_v61 = vpop.eup %1600 }
 0x47f   : > { %v1250_v62 = vadd.f32 1.0, %v1601_v61 }
 0x481   : > { %1602 = vrcp.f32 %v1250_v62  ;;  %v1262_v5 = vand.u32 2147483648, %v1250_v62  ;;  %vm1256_vm13 = vweird.f32 %v1250_v62  ;;  %v1260_v6 = vand.u32 2147483647, %v1250_v62 }
 0x483   : > { %v1263_v8 = vor.u32 1.1754944e-38, %v1262_v5  ;;  %vm1261_vm15 = vcmp.eq.f32.partialorder %v1260_v6, 8.507059e+37 }
 0x487   : > { %v1603_v63 = vpop.eup %1602 }
 0x488   : > { %v1252_v0 = vmul.f32 %v1603_v63, %v1250_v62  ;;  %vm1257_vm12 = vweird.f32 %v1603_v63 }
 0x489   : > { %vm1258_vm14 = vmor %vm1256_vm13, %vm1257_vm12 }
 0x48a   : > { %v1253_v1 = vsub.f32 1.0, %v1252_v0 }
 0x48c   : > { %v1254_v2 = vmul.f32 %v1603_v63, %v1253_v1 }
 0x48e   : > { %v1255_v3 = vadd.f32 %v1603_v63, %v1254_v2 }
 0x490   : > { %v1259_v7 = vsel %vm1258_vm14, %v1603_v63, %v1255_v3 }
 0x491   : > { %v1264_v15 = vsel %vm1261_vm15, %v1263_v8, %v1259_v7 }
 0x492   : > { %v1271_v12 = vmul.f32 %v1269_v11, %v1264_v15 }
 0x4ef   : > { %v1274_v9 = vpop.permute.xlu0 %1273 }
 0x4f0   : > { %v1276_v57 = vmul.f32 %v1274_v9, %v1264_v15 }
 0x4f2   : > { %1278 = vrot.lane.b32.xlu1 %v1276_v57, %s1632_s13 }
 0x564   : > { %v1279_v13 = vpop.permute.xlu1 %1278 }
 0x565   : > { %v1281_v14 = vadd.f32 %v1279_v13, %v1271_v12 }
 0x567   : > { %1604 = vtanh.f32 %v1281_v14 }
 0x56d   : > { %v1605_v16 = vpop.eup %1604 }
 0x56e   : > { %1284 = vrot.lane.b32.xlu0 %v1605_v16, %s1633_s17 }
 0x576   : > { %1294 = vrot.lane.b32.xlu0 %v1281_v14, %s1634_s18 }
 0x5e0   : > { %v1285_v4 = vpop.permute.xlu0 %1284 }
 0x5e1   : > { %v1287_v17 = vmul.f32 %v1285_v4, %v1264_v15 }
 0x5e3   : > { %1289 = vrot.lane.b32.xlu2 %v1287_v17, %s1632_s13 }
 0x5e8   : > { %v1295_v18 = vpop.permute.xlu0 %1294 }
 0x5e9   : > { %1297 = vst.msk [vmem:[#allocation3] sm:$0xff] %vm543_vm1, %v1295_v18 }
 0x63d   : > { %v1290_v19 = vpop.permute.xlu2 %1289 }
 0x63e   : > { %1292 = vst.msk [vmem:[#allocation2] sm:$0xff] %vm543_vm1, %v1290_v19 }
 0x63f   : > { %1298 = vst.msk [vmem:[%s511_s15] sm:$0xff] %vm543_vm1, %v1290_v19 }
 0x640 PF: > { %s25_s25 = sadd.s32 1, %s1628_s25   ;;  %s2035_s23 = smov %s1624_s24 }
 0x641   : > { %p22_p6 = scmp.ge.s32.totalorder %s25_s25, 10   ;;  %s2036_s24 = smov %s2038_s5 }
 0x643   :  { %24 = sbr.rel (!%p22_p6) target bundleno = 3 (0x3), region = 124 }

</bundles_post_ra>
